<compile_context>
chip_gen: v6e
topology: v6e:2x2x1
jax: 0.10.0
libtpu: 0.0.40
codegen_flags: <defaults>
</compile_context>

<pallas_src>
import jax
import jax.numpy as jnp
from jax import lax
from jax.experimental import pallas as pl
from jax.experimental.pallas import tpu as pltpu

BN_EPS = 1e-5
_VMEM_LIMIT = 32 * 1024 * 1024     # explicit scoped-VMEM limit (safe on v5e/v6e/v7x)
_TILE_BUDGET = 16 * 1024 * 1024    # double-buffered per-call tile budget


# ----------------------------------------------------------------------------
# Kernels
# ----------------------------------------------------------------------------
def _moments_kernel(x_ref, sum_ref, gram_ref):
    """Per-batch partial input moments: sum(x) and sum(x x^T).

    The output blocks' index map depends only on the batch grid axis, so they
    stay resident across the HW axis and are used directly as accumulators.
    """
    s = pl.program_id(1)

    @pl.when(s == 0)
    def _init():
        sum_ref[...] = jnp.zeros_like(sum_ref)
        gram_ref[...] = jnp.zeros_like(gram_ref)

    x = x_ref[...].astype(jnp.float32)                         # (Cin, ts)
    # NT matmul on the MXU: contract the spatial axis of both operands.
    gram_ref[...] += lax.dot_general(
        x, x, (((1,), (1,)), ((), ())), preferred_element_type=jnp.float32)
    sum_ref[...] += jnp.sum(x, axis=1, keepdims=True)          # (Cin, 1)


def _apply_kernel(x_ref, a_ref, c_ref, o_ref):
    """out = A_final @ x + c_final: one matmul + one broadcast add per tile."""
    x = x_ref[...].astype(jnp.float32)                         # (Cin, ts)
    y = jnp.dot(a_ref[...], x, preferred_element_type=jnp.float32) + c_ref[...]
    o_ref[...] = y.astype(o_ref.dtype)                         # lane-dense store


# ----------------------------------------------------------------------------
# pallas_call wrappers
# ----------------------------------------------------------------------------
def _round_up(v, m):
    return -(-v // m) * m


def _pick_spatial_tile(hw_p, cin, cout):
    """Largest lane-dense tile that divides hw_p and fits the VMEM budget
    (double-buffered input + output columns, f32, sublane-padded channels)."""
    bytes_per_col = 4 * 2 * (_round_up(cin, 8) + _round_up(cout, 8))
    for ts in (8192, 4096, 2048, 1024, 512, 256, 128):
        if hw_p % ts == 0 and ts * bytes_per_col <= _TILE_BUDGET:
            return ts
    return 128  # hw_p is always a multiple of 128 (padded in the wrapper)


def _input_moments(x3d, ts):
    """Per-batch partial (sum x, sum x x^T) over the (padded) spatial axis."""
    n, cin, hw_p = x3d.shape
    grid = (n, hw_p // ts)
    sum_b, gram_b = pl.pallas_call(
        _moments_kernel,
        out_shape=(
            jax.ShapeDtypeStruct((n, cin, 1), jnp.float32),
            jax.ShapeDtypeStruct((n, cin, cin), jnp.float32),
        ),
        grid=grid,
        in_specs=[pl.BlockSpec((None, cin, ts), lambda b, s: (b, 0, s))],
        out_specs=(
            pl.BlockSpec((None, cin, 1), lambda b, s: (b, 0, 0)),
            pl.BlockSpec((None, cin, cin), lambda b, s: (b, 0, 0)),
        ),
        compiler_params=pltpu.CompilerParams(
            dimension_semantics=("parallel", "arbitrary"),
            vmem_limit_bytes=_VMEM_LIMIT),
    )(x3d)
    # Tiny reduction over the batch-partial moments in plain JAX.
    return jnp.sum(sum_b, axis=0), jnp.sum(gram_b, axis=0)     # (Cin,1), (Cin,Cin)


def _apply_affine(x3d, a_mat, c_vec, ts):
    n, cin, hw_p = x3d.shape
    c_out = a_mat.shape[0]
    grid = (n, hw_p // ts)
    return pl.pallas_call(
        _apply_kernel,
        out_shape=jax.ShapeDtypeStruct((n, c_out, hw_p), jnp.float32),
        grid=grid,
        in_specs=[
            pl.BlockSpec((None, cin, ts), lambda b, s: (b, 0, s)),
            pl.BlockSpec((c_out, cin), lambda b, s: (0, 0)),
            pl.BlockSpec((c_out, 1), lambda b, s: (0, 0)),
        ],
        out_specs=pl.BlockSpec((None, c_out, ts), lambda b, s: (b, 0, s)),
        compiler_params=pltpu.CompilerParams(
            dimension_semantics=("parallel", "parallel"),
            vmem_limit_bytes=_VMEM_LIMIT),
    )(x3d, a_mat, c_vec)


# ----------------------------------------------------------------------------
# Fold [conv, BN] chain into one affine map (pure JAX, tiny C x C math)
# ----------------------------------------------------------------------------
def _solve_affine(params, mean_x, cov_x):
    """Fold every [1x1 conv, training-mode BN] layer into out = A @ x + c.

    Since the chain has no nonlinearity, every pre-BN activation is an exact
    affine map of x, so its empirical batch mean / biased variance follow
    exactly from the input moments.
    """
    cin = mean_x.shape[0]
    a = jnp.eye(cin, dtype=jnp.float32)
    c = jnp.zeros((cin, 1), jnp.float32)
    for (w, b, gamma, beta) in params:
        a_pre = w @ a                                          # (Cout, Cin)
        c_pre = w @ c + b.reshape(-1, 1)                       # (Cout, 1); bias
        #                                   cancels under training BN anyway.
        mean_y = a_pre @ mean_x + c_pre                        # (Cout, 1)
        var_y = jnp.sum((a_pre @ cov_x) * a_pre, axis=1, keepdims=True)
        var_y = jnp.maximum(var_y, 0.0)                        # biased variance
        scale = gamma.reshape(-1, 1) * lax.rsqrt(var_y + BN_EPS)
        shift = beta.reshape(-1, 1) - mean_y * scale
        a = scale * a_pre                                      # fold BN affine
        c = scale * c_pre + shift
    return a, c


# ----------------------------------------------------------------------------
# Parameters & forward
# ----------------------------------------------------------------------------
def init_params(key, dim_in, out_channels):
    """Deterministic init matching the PyTorch module's shapes.
    Conv2d weight (Cout, Cin, 1, 1) is stored as its (Cout, Cin) matrix."""
    params = []
    cin = dim_in
    for cout in out_channels:
        key, k_w, k_b = jax.random.split(key, 3)
        bound = 1.0 / float(cin) ** 0.5
        w = jax.random.uniform(k_w, (cout, cin), jnp.float32, -bound, bound)
        b = jax.random.uniform(k_b, (cout,), jnp.float32, -bound, bound)
        gamma = jnp.ones((cout,), jnp.float32)   # BN weight init
        beta = jnp.zeros((cout,), jnp.float32)   # BN bias init
        params.append((w, b, gamma, beta))
        cin = cout
    return params


@jax.jit
def mini_pointnet_forward(x_nchw, params):
    """Forward pass.  x_nchw: (N, C, H, W) -> (N, C_last, H, W)."""
    n, cin, h, w = x_nchw.shape
    hw = h * w
    m = n * hw
    c_last = params[-1][0].shape[0]

    # Free reshape only (no transpose / extra HBM pass): stays channels-first.
    x3d = x_nchw.reshape(n, cin, hw)

    # Pad the spatial axis to a multiple of 128 so tiles stay lane-dense and
    # the software pipeline engages; zero columns add nothing to the moments
    # (true count `m` is used for the mean) and are sliced off at the end.
    hw_p = _round_up(hw, 128)
    if hw_p != hw:
        x3d = jnp.pad(x3d, ((0, 0), (0, 0), (0, hw_p - hw)))

    ts = _pick_spatial_tile(hw_p, cin, c_last)
    assert hw_p % ts == 0

    # Pass 1: input moments (single pass over the data regardless of depth).
    sum_x, gram_x = _input_moments(x3d, ts)
    mean_x = sum_x / m
    # TODO(synk): E[xx^T] - mean mean^T can cancel badly if |mean| >> std over
    # very large M; subtract a per-channel pre-shift before accumulating then.
    cov_x = gram_x / m - mean_x @ mean_x.T

    # Fold the whole [conv, BN] chain into one (A, c) affine map (tiny math).
    a_mat, c_vec = _solve_affine(params, mean_x, cov_x)

    # Pass 2: fused single-matmul apply with lane-dense stores.
    out = _apply_affine(x3d, a_mat, c_vec, ts)
    return out[:, :, :hw].reshape(n, c_last, h, w)


# ----------------------------------------------------------------------------
# Pure-JAX reference (replicates PyTorch semantics incl. bias & training-mode BN)
# ----------------------------------------------------------------------------
def _reference_forward(x_nchw, params):
    x = x_nchw
    for (wm, b, gamma, beta) in params:
        y = jnp.einsum("oc,nchw->nohw", wm, x) + b[None, :, None, None]
        mean = jnp.mean(y, axis=(0, 2, 3), keepdims=True)
        var = jnp.mean((y - mean) ** 2, axis=(0, 2, 3), keepdims=True)
        x = ((y - mean) * lax.rsqrt(var + BN_EPS) * gamma[None, :, None, None]
             + beta[None, :, None, None])
    return x


if __name__ == "__main__":
    key = jax.random.PRNGKey(0)
    k_x, k_p = jax.random.split(key)

    # Small shapes consistent with the module: batch=2, dim_in=4, 16x16 "points".
    N, C_IN, H, W = 2, 4, 16, 16
    OUT_CHANNELS = [32, 64]

    x = jax.random.normal(k_x, (N, C_IN, H, W), jnp.float32)
    params = init_params(k_p, C_IN, OUT_CHANNELS)

    out = mini_pointnet_forward(x, params)
    out = jax.block_until_ready(out)

    ref = _reference_forward(x, params)
    assert out.shape == (N, OUT_CHANNELS[-1], H, W), out.shape
    assert jnp.allclose(out, ref, atol=1e-4, rtol=1e-4), \
        float(jnp.max(jnp.abs(out - ref)))

    print("KERNEL_OK")
</pallas_src>

<mosaic_0001>
module attributes {stable_mosaic.version = 11 : i64} {
  func.func @_moments_kernel(%arg0: i32, %arg1: i32, %arg2: memref<1x4x256xf32, #tpu.memory_space<vmem>>, %arg3: memref<1x4x1xf32, #tpu.memory_space<vmem>>, %arg4: memref<1x4x4xf32, #tpu.memory_space<vmem>>) attributes {dimension_semantics = [#tpu.dimension_semantics<parallel>, #tpu.dimension_semantics<arbitrary>], iteration_bounds = array<i64: 2, 1>, scalar_prefetch = 0 : i64, scratch_operands = 0 : i64, tpu.core_type = #tpu.core_type<tc>, window_params = [{transform_indices = @transform_0, window_bounds = array<i64: 1, 4, 256>}, {transform_indices = @transform_1, window_bounds = array<i64: 1, 4, 1>}, {transform_indices = @transform_2, window_bounds = array<i64: 1, 4, 4>}]} {
    %c0_i32 = arith.constant 0 : i32
    %0 = arith.cmpi eq, %arg1, %c0_i32 : i32
    %1 = arith.extui %0 : i1 to i32
    %c0_i32_0 = arith.constant 0 : i32
    %2 = arith.cmpi ne, %1, %c0_i32_0 : i32
    scf.if %2 {
      %cst_16 = arith.constant 0.000000e+00 : f32
      %20 = vector.broadcast %cst_16 : f32 to vector<4x1xf32>
      %c0_17 = arith.constant 0 : index
      %c0_18 = arith.constant 0 : index
      %c0_19 = arith.constant 0 : index
      %21 = vector.load %arg3[%c0_17, %c0_18, %c0_19] : memref<1x4x1xf32, #tpu.memory_space<vmem>>, vector<1x4x1xf32>
      %22 = vector.shape_cast %21 : vector<1x4x1xf32> to vector<4x1xf32>
      %23 = vector.shape_cast %20 : vector<4x1xf32> to vector<1x4x1xf32>
      tpu.vector_store %arg3[%c0_17, %c0_18, %c0_19], %23 {strides = array<i32>} : memref<1x4x1xf32, #tpu.memory_space<vmem>>, vector<1x4x1xf32>,
      %cst_20 = arith.constant 0.000000e+00 : f32
      %24 = vector.broadcast %cst_20 : f32 to vector<4x4xf32>
      %c0_21 = arith.constant 0 : index
      %c0_22 = arith.constant 0 : index
      %c0_23 = arith.constant 0 : index
      %25 = vector.load %arg4[%c0_21, %c0_22, %c0_23] : memref<1x4x4xf32, #tpu.memory_space<vmem>>, vector<1x4x4xf32>
      %26 = vector.shape_cast %25 : vector<1x4x4xf32> to vector<4x4xf32>
      %27 = vector.shape_cast %24 : vector<4x4xf32> to vector<1x4x4xf32>
      tpu.vector_store %arg4[%c0_21, %c0_22, %c0_23], %27 {strides = array<i32>} : memref<1x4x4xf32, #tpu.memory_space<vmem>>, vector<1x4x4xf32>,
    } else {
    }
    %c0 = arith.constant 0 : index
    %c0_1 = arith.constant 0 : index
    %c0_2 = arith.constant 0 : index
    %3 = vector.load %arg2[%c0, %c0_1, %c0_2] : memref<1x4x256xf32, #tpu.memory_space<vmem>>, vector<1x4x256xf32>
    %4 = vector.shape_cast %3 : vector<1x4x256xf32> to vector<4x256xf32>
    %c0_3 = arith.constant 0 : index
    %c0_4 = arith.constant 0 : index
    %c0_5 = arith.constant 0 : index
    %5 = vector.load %arg4[%c0_3, %c0_4, %c0_5] : memref<1x4x4xf32, #tpu.memory_space<vmem>>, vector<1x4x4xf32>
    %6 = vector.shape_cast %5 : vector<1x4x4xf32> to vector<4x4xf32>
    %cst = arith.constant dense<0.000000e+00> : vector<4x4xf32>
    %7 = tpu.matmul %4, %4, %cst {dimension_numbers = #tpu.dot_dimension_numbers<[1], [1], [0], [0], [0, 0, 1, 0], [], []>} : vector<4x256xf32>, vector<4x256xf32>, vector<4x4xf32> -> vector<4x4xf32>
    %8 = arith.addf %6, %7 : vector<4x4xf32>
    %c0_6 = arith.constant 0 : index
    %c0_7 = arith.constant 0 : index
    %c0_8 = arith.constant 0 : index
    %9 = vector.load %arg4[%c0_6, %c0_7, %c0_8] : memref<1x4x4xf32, #tpu.memory_space<vmem>>, vector<1x4x4xf32>
    %10 = vector.shape_cast %9 : vector<1x4x4xf32> to vector<4x4xf32>
    %11 = vector.shape_cast %8 : vector<4x4xf32> to vector<1x4x4xf32>
    tpu.vector_store %arg4[%c0_6, %c0_7, %c0_8], %11 {strides = array<i32>} : memref<1x4x4xf32, #tpu.memory_space<vmem>>, vector<1x4x4xf32>,
    %c0_9 = arith.constant 0 : index
    %c0_10 = arith.constant 0 : index
    %c0_11 = arith.constant 0 : index
    %12 = vector.load %arg3[%c0_9, %c0_10, %c0_11] : memref<1x4x1xf32, #tpu.memory_space<vmem>>, vector<1x4x1xf32>
    %13 = vector.shape_cast %12 : vector<1x4x1xf32> to vector<4x1xf32>
    %cst_12 = arith.constant dense<0.000000e+00> : vector<4xf32>
    %14 = vector.multi_reduction <add>, %4, %cst_12 [1] : vector<4x256xf32> to vector<4xf32>
    %15 = vector.shape_cast %14 : vector<4xf32> to vector<4x1xf32>
    %16 = arith.addf %13, %15 : vector<4x1xf32>
    %c0_13 = arith.constant 0 : index
    %c0_14 = arith.constant 0 : index
    %c0_15 = arith.constant 0 : index
    %17 = vector.load %arg3[%c0_13, %c0_14, %c0_15] : memref<1x4x1xf32, #tpu.memory_space<vmem>>, vector<1x4x1xf32>
    %18 = vector.shape_cast %17 : vector<1x4x1xf32> to vector<4x1xf32>
    %19 = vector.shape_cast %16 : vector<4x1xf32> to vector<1x4x1xf32>
    tpu.vector_store %arg3[%c0_13, %c0_14, %c0_15], %19 {strides = array<i32>} : memref<1x4x1xf32, #tpu.memory_space<vmem>>, vector<1x4x1xf32>,
    return
  }
  func.func @transform_0(%arg0: i32, %arg1: i32) -> (i32, i32, i32) {
    %c0_i32 = arith.constant 0 : i32
    %c0_i32_0 = arith.constant 0 : i32
    return %arg0, %c0_i32, %arg1 : i32, i32, i32
  }
  func.func @transform_1(%arg0: i32, %arg1: i32) -> (i32, i32, i32) {
    %c0_i32 = arith.constant 0 : i32
    %c0_i32_0 = arith.constant 0 : i32
    %c0_i32_1 = arith.constant 0 : i32
    return %arg0, %c0_i32, %c0_i32_0 : i32, i32, i32
  }
  func.func @transform_2(%arg0: i32, %arg1: i32) -> (i32, i32, i32) {
    %c0_i32 = arith.constant 0 : i32
    %c0_i32_0 = arith.constant 0 : i32
    %c0_i32_1 = arith.constant 0 : i32
    return %arg0, %c0_i32, %c0_i32_0 : i32, i32, i32
  }
}

module attributes {stable_mosaic.version = 11 : i64} {
  func.func @_apply_kernel(%arg0: i32, %arg1: i32, %arg2: memref<1x4x256xf32, #tpu.memory_space<vmem>>, %arg3: memref<64x4xf32, #tpu.memory_space<vmem>>, %arg4: memref<64x1xf32, #tpu.memory_space<vmem>>, %arg5: memref<1x64x256xf32, #tpu.memory_space<vmem>>) attributes {dimension_semantics = [#tpu.dimension_semantics<parallel>, #tpu.dimension_semantics<parallel>], iteration_bounds = array<i64: 2, 1>, scalar_prefetch = 0 : i64, scratch_operands = 0 : i64, tpu.core_type = #tpu.core_type<tc>, window_params = [{transform_indices = @transform_0, window_bounds = array<i64: 1, 4, 256>}, {pipeline_mode = #tpu.pipeline_mode<synchronous>, transform_indices = @transform_1, window_bounds = array<i64: 64, 4>}, {pipeline_mode = #tpu.pipeline_mode<synchronous>, transform_indices = @transform_2, window_bounds = array<i64: 64, 1>}, {transform_indices = @transform_3, window_bounds = array<i64: 1, 64, 256>}]} {
    %c0 = arith.constant 0 : index
    %c0_0 = arith.constant 0 : index
    %c0_1 = arith.constant 0 : index
    %0 = vector.load %arg2[%c0, %c0_0, %c0_1] : memref<1x4x256xf32, #tpu.memory_space<vmem>>, vector<1x4x256xf32>
    %1 = vector.shape_cast %0 : vector<1x4x256xf32> to vector<4x256xf32>
    %c0_2 = arith.constant 0 : index
    %c0_3 = arith.constant 0 : index
    %2 = vector.load %arg3[%c0_2, %c0_3] : memref<64x4xf32, #tpu.memory_space<vmem>>, vector<64x4xf32>
    %cst = arith.constant dense<0.000000e+00> : vector<64x256xf32>
    %3 = tpu.matmul %2, %1, %cst {dimension_numbers = #tpu.dot_dimension_numbers<[1], [0], [0], [1], [0, 0, 1, 1], [], []>} : vector<64x4xf32>, vector<4x256xf32>, vector<64x256xf32> -> vector<64x256xf32>
    %c0_4 = arith.constant 0 : index
    %c0_5 = arith.constant 0 : index
    %4 = vector.load %arg4[%c0_4, %c0_5] : memref<64x1xf32, #tpu.memory_space<vmem>>, vector<64x1xf32>
    %5 = vector.broadcast %4 : vector<64x1xf32> to vector<64x256xf32>
    %6 = arith.addf %3, %5 : vector<64x256xf32>
    %c0_6 = arith.constant 0 : index
    %c0_7 = arith.constant 0 : index
    %c0_8 = arith.constant 0 : index
    %7 = vector.load %arg5[%c0_6, %c0_7, %c0_8] : memref<1x64x256xf32, #tpu.memory_space<vmem>>, vector<1x64x256xf32>
    %8 = vector.shape_cast %7 : vector<1x64x256xf32> to vector<64x256xf32>
    %9 = vector.shape_cast %6 : vector<64x256xf32> to vector<1x64x256xf32>
    tpu.vector_store %arg5[%c0_6, %c0_7, %c0_8], %9 {strides = array<i32>} : memref<1x64x256xf32, #tpu.memory_space<vmem>>, vector<1x64x256xf32>,
    return
  }
  func.func @transform_0(%arg0: i32, %arg1: i32) -> (i32, i32, i32) {
    %c0_i32 = arith.constant 0 : i32
    %c0_i32_0 = arith.constant 0 : i32
    return %arg0, %c0_i32, %arg1 : i32, i32, i32
  }
  func.func @transform_1(%arg0: i32, %arg1: i32) -> (i32, i32) {
    %c0_i32 = arith.constant 0 : i32
    %c0_i32_0 = arith.constant 0 : i32
    %c0_i32_1 = arith.constant 0 : i32
    return %c0_i32, %c0_i32_0 : i32, i32
  }
  func.func @transform_2(%arg0: i32, %arg1: i32) -> (i32, i32) {
    %c0_i32 = arith.constant 0 : i32
    %c0_i32_0 = arith.constant 0 : i32
    %c0_i32_1 = arith.constant 0 : i32
    return %c0_i32, %c0_i32_0 : i32, i32
  }
  func.func @transform_3(%arg0: i32, %arg1: i32) -> (i32, i32, i32) {
    %c0_i32 = arith.constant 0 : i32
    %c0_i32_0 = arith.constant 0 : i32
    return %arg0, %c0_i32, %arg1 : i32, i32, i32
  }
}

</mosaic_0001>

<bundles_post_ra>
// kernel: mini_pointnet_forward.2
= control target key start
LH: loop header
LB: loop body
LE: loop exit
PB: predicated region body
PF: predicated region fallthrough
CT: control target
= control target key end

     0   :  { %s453_s9 = smov 0   ;;  %s455_s10 = smov 0   ;;  %s491_s0 = inlined_call_operand.vmem [shape: f32[2,4,256], index: 0, kind: input, shape index: {}]   ;;  %s492_s1 = inlined_call_operand.vmem [shape: f32[2,4,1], index: 1, kind: output, shape index: {0}]   ;;  %s493_s2 = inlined_call_operand.vmem [shape: f32[2,4,4], index: 2, kind: output, shape index: {1}]  }
   0x1   :  { %s457_s11 = smov 0  }
   0x2 LB: > { %s25_s12 = sadd.s32 1, %s431_s10  ;;  %p379_p0 = scmp.ge.s32.totalorder %s435_s11, 1  ;;  %s435_s11 = sphi %s457_s11, %s13_s11   ;;  %s431_s10 = sphi %s455_s10, %s495_s10   ;;  %s427_s9 = sphi %s453_s9, %s494_s9  }
   0x3   : > { %p27_p1 = scmp.ge.s32.totalorder %s25_s12, 2  ;;  %p134_p2 = scmp.lt.s32.totalorder %s435_s11, 3 }
   0x5   : > { %s497_s12 = smov (%p27_p1, %s25_s12), 0  ;;  %p135_p3 = pnand %p379_p0, %p134_p2 }
   0x6   : > { %p164_p4 = scmp.lt.s32.totalorder (!%p135_p3), %s427_s9, 1 }
   0x7   : > { %138 = sbr.rel (%p135_p3) target bundleno = 218 (0xda), region = 24 }
   0xc   : > { %s499_s9 = smov (!%p164_p4, %s427_s9), 1  ;;  %vm187_vm0 = vcmask 27648   ;;  %vm268_vm1 = vcmask 1043456   ;;  %v437_v1 = vmov 0.0   ;;  %vm185_vm2 = vcmask 3072  }
   0xd   : > { %s386_s13 = sshll.u32 %s499_s9, 3  ;;  %s382_s14 = sshll.u32 %s499_s9, 2 }
   0xe   : > { %s171_s17 = scalar_lea.vmem %s491_s0, %s386_s13  ;;  %s180_s20 = scalar_lea.vmem %s493_s2, %s382_s14 }
   0xf   : > { %v189_v0 = vld [vmem:[%s171_s17] sm:$0xff]  ;;  %188 = vst.msk [vmem:[%s180_s20] sm:$0xf] %vm187_vm0, %v437_v1  ;;  %s176_s23 = scalar_lea.vmem %s492_s1, %s382_s14 }
  0x10   : > { %v192_v2 = vcombine.high %v189_v0, %v189_v0  ;;  %v269_v3 = vsel %vm268_vm1, %v189_v0, 0.0  ;;  %186 = vst.msk [vmem:[%s176_s23] sm:$0xf] %vm185_vm2, %v437_v1 }
  0x12   : > { %224 = vmatprep.subr.mxu0 %v192_v2  ;;  %258 = vmatprep.mubr.f32.mxu0 %v192_v2  ;;  %v270_v4 = vsel %vm268_vm1, %v192_v2, 0.0 }
  0x13   : > { %225 = vmatpush1.xpose.msra.mxu0 %v189_v0  ;;  %v271_v5 = vadd.f32 %v270_v4, %v269_v3 }
  0x15   : > { %272 = vadd.xlane.f32.xlu0 %v271_v5 }
  0x16   : > { %259 = vmatmul.mubr.f32.vlgmr.msra.gmra.mxu0 %v189_v0  ;;  %v190_v9 = vld [vmem:[%s180_s20] sm:$0xf] }
  0x17   : > { %v267_v6 = vld [vmem:[%s176_s23] sm:$0xf] }
  0x9e   : > { %v273_v7 = vpop.xlane.xlu0 %272 }
  0x9f   : > { %v274_v8 = vadd.f32 %v273_v7, %v267_v6 }
  0xa1   : > { %276 = vst.msk [vmem:[%s176_s23] sm:$0xf] %vm185_vm2, %v274_v8 }
  0xd6   : > { %v260_v10 = vpop.f32.mrf.mxu0 }
  0xd7   : > { %v264_v11 = vadd.f32 %v260_v10, %v190_v9 }
  0xd8   : > { %v262_v12 = vpop.f32.mrf.mxu0 }
  0xd9   : > { %266 = vst.msk [vmem:[%s180_s20] sm:$0xf] %vm187_vm0, %v264_v11 }
  0xda PF: > { %s13_s11 = sadd.s32 1, %s435_s11   ;;  %s494_s9 = smov %s431_s10 }
  0xdb   : > { %p10_p5 = scmp.ge.s32.totalorder %s13_s11, 4   ;;  %s495_s10 = smov %s497_s12 }
  0xdd   :  { %12 = sbr.rel (!%p10_p5) target bundleno = 2 (0x2), region = 70 }

// kernel: mini_pointnet_forward.3
= control target key start
LH: loop header
LB: loop body
LE: loop exit
PB: predicated region body
PF: predicated region fallthrough
CT: control target
= control target key end

     0   :  { %s615_s12 = smov 0   ;;  %s617_s13 = smov 0   ;;  %s726_s0 = inlined_call_operand.vmem [shape: f32[2,4,256], index: 0, kind: input, shape index: {}]   ;;  %s727_s1 = inlined_call_operand.vmem [shape: f32[64,4], index: 1, kind: input, shape index: {}]   ;;  %s728_s2 = inlined_call_operand.vmem [shape: f32[64,1], index: 2, kind: input, shape index: {}]   ;;  %s729_s3 = inlined_call_operand.vmem [shape: f32[2,64,256], index: 3, kind: output, shape index: {}]  }
   0x1   :  { %s619_s14 = smov 0  }
   0x2 LB: > { %s25_s15 = sadd.s32 1, %s587_s13  ;;  %p519_p0 = scmp.ge.s32.totalorder %s591_s14, 1  ;;  %s591_s14 = sphi %s619_s14, %s13_s14   ;;  %s587_s13 = sphi %s617_s13, %s731_s13   ;;  %s583_s12 = sphi %s615_s12, %s730_s12  }
   0x3   : > { %p27_p1 = scmp.ge.s32.totalorder %s25_s15, 2  ;;  %p158_p2 = scmp.lt.s32.totalorder %s591_s14, 3 }
   0x5   : > { %s733_s15 = smov (%p27_p1, %s25_s15), 0  ;;  %p159_p3 = pnand %p519_p0, %p158_p2 }
   0x6   : > { %p191_p4 = scmp.lt.s32.totalorder (!%p159_p3), %s583_s12, 1 }
   0x7   : > { %162 = sbr.rel (%p159_p3) target bundleno = 231 (0xe7), region = 32 }
   0xc   : > { %v593_v0 = vmov 0.0   ;;  %s735_s12 = smov (!%p191_p4, %s583_s12), 1  ;;  %v594_v1 = vmov 0   ;;  %v221_v2 = vld [vmem:[%s728_s2 + $0x10] sm:$0xff]  ;;  %v219_v3 = vld [vmem:[%s728_s2] sm:$0xff]  ;;  %v222_v4 = vld [vmem:[%s728_s2 + $0x18] sm:$0xff] }
   0xd   : > { %363 = vmatprep.mubr.f32.mxu0 %v593_v0  ;;  %387 = vmatprep.mubr.f32.mxu1 %v593_v0  ;;  %s536_s20 = sshll.u32 %s735_s12, 3  ;;  %v220_v5 = vld [vmem:[%s728_s2 + $0x8] sm:$0xff]  ;;  %vm294_vm0 = vcmask 1043456   ;;  %v211_v8 = vld [vmem:[%s727_s1] sm:$0xff]  ;;  %vm269_vm1 = vcmask 31744   ;;  %v226_v14 = vld [vmem:[%s728_s2 + $0x38] sm:$0xff] }
   0xe   : > { %567 = vset.pattern.permute.xlu1 %v594_v1  ;;  %566 = vset.pattern.permute.xlu0 %v594_v1  ;;  %s198_s23 = scalar_lea.vmem %s726_s0, %s536_s20  ;;  %v215_v9 = vld [vmem:[%s727_s1 + $0x20] sm:$0xff]  ;;  %v224_v10 = vld [vmem:[%s728_s2 + $0x28] sm:$0xff]  ;;  %v225_v15 = vld [vmem:[%s728_s2 + $0x30] sm:$0xff]  ;;  %s537_s29 = sshll.u32 %s735_s12, 7 }
   0xf   : > { %239 = vperm.xlu1 %567, %v221_v2   ;;  %229 = vperm.xlu0 %566, %v219_v3   ;;  %v210_v6 = vld [vmem:[%s198_s23] sm:$0xff]  ;;  %v212_v12 = vld [vmem:[%s727_s1 + $0x8] sm:$0xff]  ;;  %v213_v16 = vld [vmem:[%s727_s1 + $0x10] sm:$0xff]  ;;  %s699_s5 = scalar_lea.vmem %s729_s3, %s537_s29 }
  0x10   : > { %v268_v7 = vcombine.high %v210_v6, %v210_v6  ;;  %v223_v11 = vld [vmem:[%s728_s2 + $0x20] sm:$0xff]  ;;  %v216_v13 = vld [vmem:[%s727_s1 + $0x28] sm:$0xff]  ;;  %v217_v17 = vld [vmem:[%s727_s1 + $0x30] sm:$0xff] }
  0x11   : > { %v214_v18 = vld [vmem:[%s727_s1 + $0x18] sm:$0xff] }
  0x12   : > { %524 = vmatprep.subr.msk.mxu0 %vm294_vm0, %v268_v7  ;;  %538 = vmatprep.subr.msk.mxu1 %vm294_vm0, %v268_v7  ;;  %v218_v19 = vld [vmem:[%s727_s1 + $0x38] sm:$0xff] }
  0x13   : > { %244 = vperm.xlu1 %567, %v222_v4   ;;  %234 = vperm.xlu0 %566, %v220_v5  }
  0x14   : > { %525 = vmatpush1.msk.msra.mxu0 %vm294_vm0, %v210_v6  ;;  %539 = vmatpush1.msk.msra.mxu1 %vm294_vm0, %v210_v6 }
  0x15   : > { %526 = vmatmul.mubr.msk.f32.vlgmr.msra.gmra.mxu0 %vm269_vm1, %v211_v8  ;;  %530 = vmatmul.mubr.msk.f32.vlgmr.msra.gmra.mxu1 %vm269_vm1, %v215_v9 }
  0x16   : > { %369 = vmatprep.mubr.f32.mxu0 %v593_v0  ;;  %393 = vmatprep.mubr.f32.mxu1 %v593_v0 }
  0x17   : > { %254 = vperm.xlu1 %567, %v224_v10   ;;  %249 = vperm.xlu0 %566, %v223_v11  }
  0x19   : > { %527 = vmatmul.mubr.msk.f32.gmra.mxu0 %vm269_vm1, %v212_v12  ;;  %531 = vmatmul.mubr.msk.f32.gmra.mxu1 %vm269_vm1, %v216_v13 }
  0x1a   : > { %375 = vmatprep.mubr.f32.mxu0 %v593_v0  ;;  %399 = vmatprep.mubr.f32.mxu1 %v593_v0 }
  0x1b   : > { %264 = vperm.xlu1 %567, %v226_v14   ;;  %259 = vperm.xlu0 %566, %v225_v15  }
  0x1d   : > { %528 = vmatmul.mubr.msk.f32.gmra.mxu0 %vm269_vm1, %v213_v16  ;;  %532 = vmatmul.mubr.msk.f32.gmra.mxu1 %vm269_vm1, %v217_v17 }
  0x1e   : > { %381 = vmatprep.mubr.f32.mxu0 %v593_v0  ;;  %405 = vmatprep.mubr.f32.mxu1 %v593_v0 }
  0x21   : > { %529 = vmatmul.mubr.msk.f32.gmra.mxu0 %vm269_vm1, %v214_v18  ;;  %533 = vmatmul.mubr.msk.f32.gmra.mxu1 %vm269_vm1, %v218_v19 }
  0x8a   : > { %v230_v20 = vpop.permute.xlu0 %229  ;;  %v240_v21 = vpop.permute.xlu1 %239 }
  0x8e   : > { %v235_v22 = vpop.permute.xlu0 %234  ;;  %v245_v23 = vpop.permute.xlu1 %244 }
  0x92   : > { %v250_v24 = vpop.permute.xlu0 %249  ;;  %v255_v31 = vpop.permute.xlu1 %254 }
  0x96   : > { %v260_v40 = vpop.permute.xlu0 %259  ;;  %v265_v49 = vpop.permute.xlu1 %264 }
  0xd5   : > { %v365_v25 = vpop.f32.mrf.mxu0  ;;  %v389_v26 = vpop.f32.mrf.mxu1 }
  0xd6   : > { %v366_v27 = vadd.f32 %v365_v25, %v230_v20  ;;  %v390_v28 = vadd.f32 %v389_v26, %v250_v24 }
  0xd7   : > { %v367_v29 = vpop.f32.mrf.mxu0  ;;  %v391_v30 = vpop.f32.mrf.mxu1 }
  0xd8   : > { %412 = vst [vmem:[%s699_s5] sm:$0xff] %v366_v27  ;;  %420 = vst [vmem:[%s699_s5 + $0x40] sm:$0xff] %v390_v28  ;;  %v368_v32 = vadd.f32 %v367_v29, %v230_v20  ;;  %v392_v33 = vadd.f32 %v391_v30, %v250_v24 }
  0xd9   : > { %v371_v34 = vpop.f32.mrf.mxu0  ;;  %v395_v35 = vpop.f32.mrf.mxu1 }
  0xda   : > { %413 = vst [vmem:[%s699_s5 + $0x8] sm:$0xff] %v368_v32  ;;  %421 = vst [vmem:[%s699_s5 + $0x48] sm:$0xff] %v392_v33  ;;  %v372_v36 = vadd.f32 %v371_v34, %v235_v22  ;;  %v396_v37 = vadd.f32 %v395_v35, %v255_v31 }
  0xdb   : > { %v373_v38 = vpop.f32.mrf.mxu0  ;;  %v397_v39 = vpop.f32.mrf.mxu1 }
  0xdc   : > { %414 = vst [vmem:[%s699_s5 + $0x10] sm:$0xff] %v372_v36  ;;  %422 = vst [vmem:[%s699_s5 + $0x50] sm:$0xff] %v396_v37  ;;  %v374_v41 = vadd.f32 %v373_v38, %v235_v22  ;;  %v398_v42 = vadd.f32 %v397_v39, %v255_v31 }
  0xdd   : > { %v377_v43 = vpop.f32.mrf.mxu0  ;;  %v401_v44 = vpop.f32.mrf.mxu1 }
  0xde   : > { %415 = vst [vmem:[%s699_s5 + $0x18] sm:$0xff] %v374_v41  ;;  %423 = vst [vmem:[%s699_s5 + $0x58] sm:$0xff] %v398_v42  ;;  %v378_v45 = vadd.f32 %v377_v43, %v240_v21  ;;  %v402_v46 = vadd.f32 %v401_v44, %v260_v40 }
  0xdf   : > { %v379_v47 = vpop.f32.mrf.mxu0  ;;  %v403_v48 = vpop.f32.mrf.mxu1 }
  0xe0   : > { %416 = vst [vmem:[%s699_s5 + $0x20] sm:$0xff] %v378_v45  ;;  %424 = vst [vmem:[%s699_s5 + $0x60] sm:$0xff] %v402_v46  ;;  %v380_v50 = vadd.f32 %v379_v47, %v240_v21  ;;  %v404_v51 = vadd.f32 %v403_v48, %v260_v40 }
  0xe1   : > { %v383_v52 = vpop.f32.mrf.mxu0  ;;  %v407_v53 = vpop.f32.mrf.mxu1 }
  0xe2   : > { %417 = vst [vmem:[%s699_s5 + $0x28] sm:$0xff] %v380_v50  ;;  %425 = vst [vmem:[%s699_s5 + $0x68] sm:$0xff] %v404_v51  ;;  %v384_v54 = vadd.f32 %v383_v52, %v245_v23  ;;  %v408_v55 = vadd.f32 %v407_v53, %v265_v49 }
  0xe3   : > { %v385_v56 = vpop.f32.mrf.mxu0  ;;  %v409_v57 = vpop.f32.mrf.mxu1 }
  0xe4   : > { %418 = vst [vmem:[%s699_s5 + $0x30] sm:$0xff] %v384_v54  ;;  %426 = vst [vmem:[%s699_s5 + $0x70] sm:$0xff] %v408_v55  ;;  %v386_v58 = vadd.f32 %v385_v56, %v245_v23  ;;  %v410_v59 = vadd.f32 %v409_v57, %v265_v49 }
  0xe6   : > { %419 = vst [vmem:[%s699_s5 + $0x38] sm:$0xff] %v386_v58  ;;  %427 = vst [vmem:[%s699_s5 + $0x78] sm:$0xff] %v410_v59 }
  0xe7 PF: > { %s13_s14 = sadd.s32 1, %s591_s14   ;;  %s730_s12 = smov %s587_s13 }
  0xe8   : > { %p10_p5 = scmp.ge.s32.totalorder %s13_s14, 4   ;;  %s731_s13 = smov %s733_s15 }
  0xea   :  { %12 = sbr.rel (!%p10_p5) target bundleno = 2 (0x2), region = 62 }

</bundles_post_ra>
